<compile_context>
chip_gen: v7x
topology: tpu7x:2x2x1
jax: 0.10.0
libtpu: 0.0.40
codegen_flags: <defaults>
</compile_context>

<pallas_src>
import functools

import jax
import jax.numpy as jnp
from jax.experimental import pallas as pl
from jax.experimental.pallas import tpu as pltpu


def _cdiv(a, b):
    return -(-a // b)


def _dice_bce_kernel(logits_ref, tgt_ref, out_ref, acc_ref, *, hw, needs_mask):
    i = pl.program_id(1)              # pixel tile within the batch tile
    blk = logits_ref.shape[2]

    @pl.when(i == 0)
    def _init():
        acc_ref[...] = jnp.zeros_like(acc_ref)

    logits = logits_ref[...].astype(jnp.float32)          # (nb, C, blk)
    tgt = tgt_ref[...].astype(jnp.int32)                  # (nb, 1, blk)

    # Per-pixel cross entropy: logsumexp(logits) - logit[target].
    # Fused one-hot gather: where+sum instead of compare->cast->mul->sum.
    class_ids = jax.lax.broadcasted_iota(jnp.int32, logits.shape, 1)
    tgt_logit = jnp.sum(jnp.where(class_ids == tgt, logits, 0.0),
                        axis=1, keepdims=True)                          # (nb, 1, blk)
    max_logit = jnp.max(logits, axis=1, keepdims=True)                  # (nb, 1, blk)
    lse = max_logit + jnp.log(
        jnp.sum(jnp.exp(logits - max_logit), axis=1, keepdims=True))    # (nb, 1, blk)
    ce = lse - tgt_logit                                                # (nb, 1, blk)

    if needs_mask:
        # Wrapper zero-pads the pixel axis; padded pixels already contribute 0 to
        # pred/tgt/inter (all-zero logits tie-break to class 0, targets padded 0),
        # so only the CE term needs masking -- and only when padding exists.
        col = jax.lax.broadcasted_iota(jnp.int32, (1, 1, blk), 2)
        ce = jnp.where(i * blk + col < hw, ce, 0.0)

    # argmax(inputs, dim=class) > 0.5  <=>  the max is NOT attained at class 0
    # (ties break toward the first index, matching argmax semantics).
    pred_mask = (max_logit > logits[:, 0:1, :]).astype(jnp.float32)     # (nb, 1, blk)
    tgt_f = tgt.astype(jnp.float32)                                     # (nb, 1, blk)
    inter = pred_mask * tgt_f

    # Element-wise VPU accumulation into one (4, blk) scratch (rows: ce, pred, tgt,
    # inter); no cross-lane reduce in the hot loop.
    # TODO(synk): a single stacked (4, blk) += would cut accumulator store slots 4x
    # on v5e, but sublane-concat of 1-row operands is lowering-fragile; kept as
    # four static row-slice updates.
    acc_ref[0:1, :] += jnp.sum(ce, axis=0)
    acc_ref[1:2, :] += jnp.sum(pred_mask, axis=0)
    acc_ref[2:3, :] += jnp.sum(tgt_f, axis=0)
    acc_ref[3:4, :] += jnp.sum(inter, axis=0)

    @pl.when(i == pl.num_programs(1) - 1)
    def _finalize():
        # One cross-lane reduce per batch tile; the dice/BCE scalar formula is done
        # in the wrapper so the batch axis can be "parallel" (megacore on v7x).
        out_ref[...] = jnp.sum(acc_ref[...], axis=1, keepdims=True)     # (4, 1)


def dice_bce_loss(inputs, targets, smooth=1.0, *,
                  target_step_bytes=4 << 20, vmem_budget_bytes=32 << 20):
    """inputs: (N, C, H, W) float logits (any float dtype);
    targets: (N, H, W) integer class ids (narrow dtypes like uint8 stay narrow)."""
    N, C, H, W = inputs.shape
    hw = H * W

    tgt = targets
    if not jnp.issubdtype(tgt.dtype, jnp.integer):
        tgt = tgt.astype(jnp.int32)   # only for float targets; integer dtypes pass through

    logits_bytes = jnp.dtype(inputs.dtype).itemsize
    tgt_bytes = jnp.dtype(tgt.dtype).itemsize
    per_pixel_in = C * logits_bytes + tgt_bytes
    # double-buffered inputs + (4, blk) f32 accumulator (padded to 8 sublanes)
    vmem_per_pixel = 2 * per_pixel_in + 8 * 4

    hw128 = _cdiv(hw, 128) * 128
    blk_cap = min(target_step_bytes // per_pixel_in,
                  vmem_budget_bytes // vmem_per_pixel)
    blk_cap = max(128, (blk_cap // 128) * 128)

    if blk_cap >= hw128:
        # Whole (128-padded) image per pixel step; fold several batch images per
        # step so each grid step still moves ~target bytes, but keep >=2 batch
        # tiles when possible so v7x megacore has something to split.
        blk, grid_i = hw128, 1
        want = min(target_step_bytes // (hw128 * per_pixel_in),
                   vmem_budget_bytes // (hw128 * vmem_per_pixel),
                   max(1, N // 2))
        want = max(1, min(want, N))
        nb = max(d for d in range(1, want + 1) if N % d == 0)
    else:
        grid_i = _cdiv(hw128, blk_cap)
        blk = _cdiv(_cdiv(hw128, grid_i), 128) * 128      # balanced, <= blk_cap
        nb = 1

    hw_padded = grid_i * blk
    grid_n = N // nb
    needs_mask = hw_padded != hw

    # Free reshapes; a one-time zero pad only when the pixel count is not 128-aligned.
    logits = inputs.reshape(N, C, hw)
    tgt = tgt.reshape(N, 1, hw)
    if needs_mask:
        pad = hw_padded - hw
        logits = jnp.pad(logits, ((0, 0), (0, 0), (0, pad)))
        tgt = jnp.pad(tgt, ((0, 0), (0, 0), (0, pad)))

    kernel = functools.partial(_dice_bce_kernel, hw=hw, needs_mask=needs_mask)

    vmem_need = 2 * nb * blk * per_pixel_in + 8 * blk * 4 + (1 << 16)
    vmem_limit = int(min(max(32 << 20, vmem_need + (16 << 20)), 100 << 20))

    cost = pl.CostEstimate(
        flops=int(10 * N * C * hw),
        transcendentals=int(N * C * hw + N * hw),
        bytes_accessed=int(N * hw * per_pixel_in + grid_n * 4 * 4),
    )

    partials = pl.pallas_call(
        kernel,
        out_shape=jax.ShapeDtypeStruct((grid_n, 4, 1), jnp.float32),
        grid_spec=pltpu.PrefetchScalarGridSpec(
            num_scalar_prefetch=0,
            grid=(grid_n, grid_i),
            in_specs=[
                pl.BlockSpec((nb, C, blk), lambda n, i: (n, 0, i)),
                pl.BlockSpec((nb, 1, blk), lambda n, i: (n, 0, i)),
            ],
            out_specs=pl.BlockSpec((None, 4, 1), lambda n, i: (n, 0, 0)),
            scratch_shapes=[pltpu.VMEM((4, blk), jnp.float32)],
        ),
        compiler_params=pltpu.CompilerParams(
            dimension_semantics=("parallel", "arbitrary"),
            vmem_limit_bytes=vmem_limit),
        cost_estimate=cost,
    )(logits, tgt)

    # Final combine on 4*grid_n scalars in plain JAX.
    sums = jnp.sum(partials[..., 0], axis=0)              # [ce, pred, tgt, inter]
    ce_mean = sums[0] / jnp.float32(N * hw)
    dice = 1.0 - (2.0 * sums[3] + smooth) / (sums[1] + sums[2] + smooth)
    return 0.05 * ce_mean + 0.95 * dice


def _reference_loss(inputs, targets, smooth=1.0):
    """Pure-JAX reference mirroring the PyTorch forward exactly."""
    pred = jnp.argmax(inputs, axis=1).reshape(-1)
    tgt = targets.reshape(-1).astype(jnp.float32)
    pred_mask = (pred > 0.5).astype(jnp.float32)
    inter = jnp.sum(pred_mask * tgt)
    dice = 1.0 - (2.0 * inter + smooth) / (jnp.sum(pred_mask) + jnp.sum(tgt) + smooth)
    logits = jnp.transpose(inputs, (0, 2, 3, 1)).reshape(-1, inputs.shape[1])
    logp = jax.nn.log_softmax(logits, axis=-1)
    ce = -jnp.mean(jnp.take_along_axis(
        logp, targets.reshape(-1, 1).astype(jnp.int32), axis=-1))
    return 0.05 * ce + 0.95 * dice


if __name__ == "__main__":
    key = jax.random.PRNGKey(0)
    k1, k2 = jax.random.split(key)

    N, C, H, W = 2, 4, 16, 16
    inputs = jax.random.normal(k1, (N, C, H, W), dtype=jnp.float32)
    targets = jax.random.randint(k2, (N, H, W), 0, 2, dtype=jnp.int32)

    loss = dice_bce_loss(inputs, targets, smooth=1.0)
    loss = jax.block_until_ready(loss)

    ref = _reference_loss(inputs, targets, smooth=1.0)
    assert jnp.allclose(loss, ref, atol=1e-5, rtol=1e-5), (loss, ref)

    print("KERNEL_OK")
</pallas_src>

<mosaic_0001>
module attributes {stable_mosaic.version = 11 : i64} {
  func.func @_dice_bce_kernel(%arg0: i32, %arg1: i32, %arg2: memref<1x4x256xf32, #tpu.memory_space<vmem>>, %arg3: memref<1x1x256xi32, #tpu.memory_space<vmem>>, %arg4: memref<1x4x1xf32, #tpu.memory_space<vmem>>, %arg5: memref<4x256xf32, #tpu.memory_space<vmem>>) attributes {dimension_semantics = [#tpu.dimension_semantics<parallel>, #tpu.dimension_semantics<arbitrary>], iteration_bounds = array<i64: 2, 1>, scalar_prefetch = 0 : i64, scratch_operands = 1 : i64, tpu.core_type = #tpu.core_type<tc>, window_params = [{transform_indices = @transform_0, window_bounds = array<i64: 1, 4, 256>}, {transform_indices = @transform_1, window_bounds = array<i64: 1, 1, 256>}, {transform_indices = @transform_2, window_bounds = array<i64: 1, 4, 1>}]} {
    %c0_i32 = arith.constant 0 : i32
    %0 = arith.cmpi eq, %arg1, %c0_i32 : i32
    %1 = arith.extui %0 : i1 to i32
    %c0_i32_0 = arith.constant 0 : i32
    %2 = arith.cmpi ne, %1, %c0_i32_0 : i32
    scf.if %2 {
      %cst_28 = arith.constant 0.000000e+00 : f32
      %47 = vector.broadcast %cst_28 : f32 to vector<4x256xf32>
      %c0_29 = arith.constant 0 : index
      %c0_30 = arith.constant 0 : index
      %48 = vector.load %arg5[%c0_29, %c0_30] : memref<4x256xf32, #tpu.memory_space<vmem>>, vector<4x256xf32>
      tpu.vector_store %arg5[%c0_29, %c0_30], %47 {strides = array<i32>} : memref<4x256xf32, #tpu.memory_space<vmem>>, vector<4x256xf32>,
    } else {
    }
    %c0 = arith.constant 0 : index
    %c0_1 = arith.constant 0 : index
    %c0_2 = arith.constant 0 : index
    %3 = vector.load %arg2[%c0, %c0_1, %c0_2] : memref<1x4x256xf32, #tpu.memory_space<vmem>>, vector<1x4x256xf32>
    %c0_3 = arith.constant 0 : index
    %c0_4 = arith.constant 0 : index
    %c0_5 = arith.constant 0 : index
    %4 = vector.load %arg3[%c0_3, %c0_4, %c0_5] : memref<1x1x256xi32, #tpu.memory_space<vmem>>, vector<1x1x256xi32>
    %5 = tpu.iota {dimensions = array<i32: 1>} : vector<1x4x256xi32>
    %6 = vector.broadcast %4 : vector<1x1x256xi32> to vector<1x4x256xi32>
    %7 = arith.cmpi eq, %5, %6 : vector<1x4x256xi32>
    %cst = arith.constant 0.000000e+00 : f32
    %8 = vector.broadcast %cst : f32 to vector<1x4x256xf32>
    %9 = arith.select %7, %3, %8 : vector<1x4x256xi1>, vector<1x4x256xf32>
    %cst_6 = arith.constant dense<0.000000e+00> : vector<1x256xf32>
    %10 = vector.multi_reduction <add>, %9, %cst_6 [1] : vector<1x4x256xf32> to vector<1x256xf32>
    %11 = vector.shape_cast %10 : vector<1x256xf32> to vector<1x1x256xf32>
    %cst_7 = arith.constant dense<0xFF800000> : vector<1x256xf32>
    %12 = vector.multi_reduction <maximumf>, %3, %cst_7 [1] : vector<1x4x256xf32> to vector<1x256xf32>
    %13 = vector.shape_cast %12 : vector<1x256xf32> to vector<1x1x256xf32>
    %14 = vector.broadcast %13 : vector<1x1x256xf32> to vector<1x4x256xf32>
    %15 = arith.subf %3, %14 : vector<1x4x256xf32>
    %16 = math.exp %15 : vector<1x4x256xf32>
    %cst_8 = arith.constant dense<0.000000e+00> : vector<1x256xf32>
    %17 = vector.multi_reduction <add>, %16, %cst_8 [1] : vector<1x4x256xf32> to vector<1x256xf32>
    %18 = vector.shape_cast %17 : vector<1x256xf32> to vector<1x1x256xf32>
    %19 = math.log %18 : vector<1x1x256xf32>
    %20 = arith.addf %13, %19 : vector<1x1x256xf32>
    %21 = arith.subf %20, %11 : vector<1x1x256xf32>
    %22 = vector.extract_strided_slice %3 {offsets = [0, 0, 0], sizes = [1, 1, 256], strides = [1, 1, 1]} : vector<1x4x256xf32> to vector<1x1x256xf32>
    %23 = arith.cmpf ogt, %13, %22 : vector<1x1x256xf32>
    %24 = arith.extui %23 : vector<1x1x256xi1> to vector<1x1x256xi32>
    %25 = arith.sitofp %24 : vector<1x1x256xi32> to vector<1x1x256xf32>
    %26 = arith.sitofp %4 : vector<1x1x256xi32> to vector<1x1x256xf32>
    %27 = arith.mulf %25, %26 : vector<1x1x256xf32>
    %c0_9 = arith.constant 0 : index
    %c0_10 = arith.constant 0 : index
    %28 = vector.load %arg5[%c0_9, %c0_10] : memref<4x256xf32, #tpu.memory_space<vmem>>, vector<1x256xf32>
    %cst_11 = arith.constant dense<0.000000e+00> : vector<1x256xf32>
    %29 = vector.multi_reduction <add>, %21, %cst_11 [0] : vector<1x1x256xf32> to vector<1x256xf32>
    %30 = arith.addf %28, %29 : vector<1x256xf32>
    %c0_12 = arith.constant 0 : index
    %c0_13 = arith.constant 0 : index
    %31 = vector.load %arg5[%c0_12, %c0_13] : memref<4x256xf32, #tpu.memory_space<vmem>>, vector<1x256xf32>
    tpu.vector_store %arg5[%c0_12, %c0_13], %30 {strides = array<i32>} : memref<4x256xf32, #tpu.memory_space<vmem>>, vector<1x256xf32>,
    %c1 = arith.constant 1 : index
    %c0_14 = arith.constant 0 : index
    %32 = vector.load %arg5[%c1, %c0_14] : memref<4x256xf32, #tpu.memory_space<vmem>>, vector<1x256xf32>
    %cst_15 = arith.constant dense<0.000000e+00> : vector<1x256xf32>
    %33 = vector.multi_reduction <add>, %25, %cst_15 [0] : vector<1x1x256xf32> to vector<1x256xf32>
    %34 = arith.addf %32, %33 : vector<1x256xf32>
    %c1_16 = arith.constant 1 : index
    %c0_17 = arith.constant 0 : index
    %35 = vector.load %arg5[%c1_16, %c0_17] : memref<4x256xf32, #tpu.memory_space<vmem>>, vector<1x256xf32>
    tpu.vector_store %arg5[%c1_16, %c0_17], %34 {strides = array<i32>} : memref<4x256xf32, #tpu.memory_space<vmem>>, vector<1x256xf32>,
    %c2 = arith.constant 2 : index
    %c0_18 = arith.constant 0 : index
    %36 = vector.load %arg5[%c2, %c0_18] : memref<4x256xf32, #tpu.memory_space<vmem>>, vector<1x256xf32>
    %cst_19 = arith.constant dense<0.000000e+00> : vector<1x256xf32>
    %37 = vector.multi_reduction <add>, %26, %cst_19 [0] : vector<1x1x256xf32> to vector<1x256xf32>
    %38 = arith.addf %36, %37 : vector<1x256xf32>
    %c2_20 = arith.constant 2 : index
    %c0_21 = arith.constant 0 : index
    %39 = vector.load %arg5[%c2_20, %c0_21] : memref<4x256xf32, #tpu.memory_space<vmem>>, vector<1x256xf32>
    tpu.vector_store %arg5[%c2_20, %c0_21], %38 {strides = array<i32>} : memref<4x256xf32, #tpu.memory_space<vmem>>, vector<1x256xf32>,
    %c3 = arith.constant 3 : index
    %c0_22 = arith.constant 0 : index
    %40 = vector.load %arg5[%c3, %c0_22] : memref<4x256xf32, #tpu.memory_space<vmem>>, vector<1x256xf32>
    %cst_23 = arith.constant dense<0.000000e+00> : vector<1x256xf32>
    %41 = vector.multi_reduction <add>, %27, %cst_23 [0] : vector<1x1x256xf32> to vector<1x256xf32>
    %42 = arith.addf %40, %41 : vector<1x256xf32>
    %c3_24 = arith.constant 3 : index
    %c0_25 = arith.constant 0 : index
    %43 = vector.load %arg5[%c3_24, %c0_25] : memref<4x256xf32, #tpu.memory_space<vmem>>, vector<1x256xf32>
    tpu.vector_store %arg5[%c3_24, %c0_25], %42 {strides = array<i32>} : memref<4x256xf32, #tpu.memory_space<vmem>>, vector<1x256xf32>,
    %c0_i32_26 = arith.constant 0 : i32
    %44 = arith.cmpi eq, %arg1, %c0_i32_26 : i32
    %45 = arith.extui %44 : i1 to i32
    %c0_i32_27 = arith.constant 0 : i32
    %46 = arith.cmpi ne, %45, %c0_i32_27 : i32
    scf.if %46 {
      %c0_28 = arith.constant 0 : index
      %c0_29 = arith.constant 0 : index
      %47 = vector.load %arg5[%c0_28, %c0_29] : memref<4x256xf32, #tpu.memory_space<vmem>>, vector<4x256xf32>
      %cst_30 = arith.constant dense<0.000000e+00> : vector<4xf32>
      %48 = vector.multi_reduction <add>, %47, %cst_30 [1] : vector<4x256xf32> to vector<4xf32>
      %49 = vector.shape_cast %48 : vector<4xf32> to vector<4x1xf32>
      %c0_31 = arith.constant 0 : index
      %c0_32 = arith.constant 0 : index
      %c0_33 = arith.constant 0 : index
      %50 = vector.load %arg4[%c0_31, %c0_32, %c0_33] : memref<1x4x1xf32, #tpu.memory_space<vmem>>, vector<1x4x1xf32>
      %51 = vector.shape_cast %50 : vector<1x4x1xf32> to vector<4x1xf32>
      %52 = vector.shape_cast %49 : vector<4x1xf32> to vector<1x4x1xf32>
      tpu.vector_store %arg4[%c0_31, %c0_32, %c0_33], %52 {strides = array<i32>} : memref<1x4x1xf32, #tpu.memory_space<vmem>>, vector<1x4x1xf32>,
    } else {
    }
    return
  }
  func.func @transform_0(%arg0: i32, %arg1: i32) -> (i32, i32, i32) {
    %c0_i32 = arith.constant 0 : i32
    %c0_i32_0 = arith.constant 0 : i32
    return %arg0, %c0_i32, %arg1 : i32, i32, i32
  }
  func.func @transform_1(%arg0: i32, %arg1: i32) -> (i32, i32, i32) {
    %c0_i32 = arith.constant 0 : i32
    %c0_i32_0 = arith.constant 0 : i32
    return %arg0, %c0_i32, %arg1 : i32, i32, i32
  }
  func.func @transform_2(%arg0: i32, %arg1: i32) -> (i32, i32, i32) {
    %c0_i32 = arith.constant 0 : i32
    %c0_i32_0 = arith.constant 0 : i32
    %c0_i32_1 = arith.constant 0 : i32
    return %arg0, %c0_i32, %c0_i32_0 : i32, i32, i32
  }
}

</mosaic_0001>

<bundles_post_ra>
// kernel: tpu_custom_call.1
= control target key start
LH: loop header
LB: loop body
LE: loop exit
PB: predicated region body
PF: predicated region fallthrough
CT: control target
= control target key end

     0   :  { %7 = vsyncpa [#allocation4], 0  ;;  %s969_s0 = inlined_call_operand.hbm [shape: f32[2,4,256], index: 0, kind: input, shape index: {}]   ;;  %s970_s1 = inlined_call_operand.hbm [shape: s32[2,1,256], index: 1, kind: input, shape index: {}]   ;;  %s971_s2 = inlined_call_operand.vmem [shape: f32[2,4,1], index: 2, kind: output, shape index: {}]  }
   0x1   :  { %9 = vsyncpa [#allocation4 + $0x1], 0 }
   0x2   :  { %10 = vsyncpa [#allocation6], 0 }
   0x3   :  { %12 = vsyncpa [#allocation6 + $0x1], 0  ;;  %s756_s9 = smov 0   ;;  %s758_s10 = smov 0  }
   0x4   :  { %s760_s11 = smov 0   ;;  %s762_s12 = smov 0  }
   0x5   :  { %s764_s13 = smov 0   ;;  %s766_s14 = smov 0  }
   0x6 LB: > { %s531_s15 = sadd.s32 4294967295, %s735_s14   ;;  %s30_s16 = sadd.s32 1, %s731_s13  ;;  %s735_s14 = sphi %s766_s14, %s18_s14   ;;  %s731_s13 = sphi %s764_s13, %s987_s13   ;;  %s727_s12 = sphi %s762_s12, %s986_s12   ;;  %s723_s11 = sphi %s760_s11, %s985_s11   ;;  %s719_s10 = sphi %s758_s10, %s984_s10   ;;  %s715_s9 = sphi %s756_s9, %s983_s9  }
   0x7   : > { %p32_p0 = scmp.ge.s32.totalorder %s30_s16, 2  ;;  %s39_s17 = sadd.s32 1, %s723_s11 }
   0x8   : > { %p46_p1 = scmp.ne.s32.totalorder %s723_s11, %s719_s10  ;;  %p47_p2 = scmp.eq.s32.totalorder %s735_s14, 0 }
   0x9   : > { %s989_s16 = smov (%p32_p0, %s30_s16), 0  ;;  %p52_p4 = scmp.ne.s32.totalorder %s719_s10, %s715_s9 }
   0xa   : > { %p792_p3 = por %p47_p2, %p46_p1  ;;  %s34_s19 = ssub.s32 %s731_s13, %s989_s16 }
   0xb   : > { %p53_p5 = scmp.eq.s32.totalorder %s531_s15, 0  ;;  %p37_p6 = scmp.eq.s32.totalorder %s34_s19, 0 }
   0xc   : > { %p562_p8 = scmp.lt.s32.totalorder %s735_s14, 2  ;;  %s808_s22 = sand.u32 1, %s723_s11  }
   0xd   : > { %p799_p7 = por %p53_p5, %p52_p4  ;;  %s549_s23 = sshll.u32 %s731_s13, 7 }
   0xe   : > { %s805_s21 = scalar_select %p37_p6, %s723_s11, %s39_s17  }
   0xf   : > { %s974_s20 = scalar_select %p799_p7, 1, 0 }
  0x10   : > { %s535_s24 = sshll.u32 %s808_s22, 3  ;;  %s815_s27 = scalar_lea.hbm %s969_s0, %s549_s23 }
  0x11   : > { %s134_s28 = scalar_lea.vmem [#allocation3], %s535_s24  ;;  %p819_p9 = pnand %p562_p8, %p792_p3 }
  0x12   : > { %s144_s29 = sshll.u32 %s134_s28, 4  ;;  %s131_s3 = scalar_lea.sflag [#allocation4], %s808_s22  ;;  %s823_s29 = int_to_ptr.vmem [resolvable:$true] %s144_s29 }
  0x13   : > { %s621_s4 = scalar_lea.hbm %s815_s27, 128  ;;  %p623_p13 = pneg %p819_p9 }
  0x14   : > { %p622_p12 = scmp.ne.s32.totalorder %s815_s27, %s621_s4  ;;  %s626_s7 = scalar_lea.hbm %s969_s0, 256 }
  0x15   : > { %p627_p2 = scmp.lt.u32.totalorder %s815_s27, %s969_s0  ;;  %p628_p3 = scmp.lt.u32.totalorder %s626_s7, %s621_s4 }
  0x16   : > { %p624_p0 = pnand %p623_p13, %p622_p12  ;;  %p630_p5 = scmp.lt.u32.totalorder %s621_s4, %s815_s27 }
  0x17   : > { %p629_p4 = por %p628_p3, %p627_p2 }
  0x18   : > { %p625_p1 = pneg %p624_p0 }
  0x19   : > { %p631_p6 = por %p630_p5, %p629_p4 }
  0x1b   : > { %p632_p8 = pnand %p631_p6, %p625_p1 }
  0x1d   : > { %635 = shalt.err (!%p632_p8)
}
  0x1e   : > { %s636_s15 = scalar_lea.vmem %s823_s29, 128  ;;  %s737_s17 = smov [#allocation3]  }
  0x1f   : > { %p637_p12 = scmp.ne.s32.totalorder %s823_s29, %s636_s15  ;;  %s641_s18 = sshll.u32 %s737_s17, 4  ;;  %s642_s18 = int_to_ptr.vmem [resolvable:$false] %s641_s18 }
  0x20   : > { %s643_s19 = scalar_lea.vmem %s642_s18, 256  ;;  %p644_p11 = scmp.lt.s32.totalorder %s823_s29, %s642_s18 }
  0x21   : > { %p639_p0 = pnand %p637_p12, %p623_p13  ;;  %p645_p2 = scmp.lt.s32.totalorder %s643_s19, %s636_s15 }
  0x23   : > { %p640_p10 = pneg %p639_p0  ;;  %p646_p3 = por %p645_p2, %p644_p11 }
  0x25   : > { %p647_p4 = pnand %p646_p3, %p640_p10 }
  0x27   : > { %650 = shalt.err (!%p647_p4)
}
  0x28   : > { %558 = dma.hbm_to_vmem [thread:$0]  (!%p819_p9), %s815_s27, 128, %s823_s29, %s131_s3  }
  0x29   : > { %p976_p1 = scmp.lt.s32.totalorder %s735_s14, 3  ;;  %p977_p5 = scmp.ge.s32.totalorder %s735_s14, 1 }
  0x2a   : > { %s538_s24 = sshll.u32 %s808_s22, 1  ;;  %s550_s25 = sshll.u32 %s731_s13, 5 }
  0x2b   : > { %p857_p6 = pnand %p977_p5, %p976_p1  ;;  %s866_s4 = scalar_lea.hbm %s970_s1, %s550_s25 }
  0x2c   : > { %s155_s5 = scalar_lea.vmem [#allocation5], %s538_s24  ;;  %s152_s27 = scalar_lea.sflag [#allocation6], %s808_s22 }
  0x2d   : > { %s978_s23 = scalar_select %p857_p6, 1, 0 }
  0x2e   : > { %s165_s6 = sshll.u32 %s155_s5, 4  ;;  %s651_s29 = scalar_lea.hbm %s866_s4, 32  ;;  %s166_s6 = int_to_ptr.vmem [resolvable:$true] %s165_s6 }
  0x2f   : > { %p652_p10 = scmp.ne.s32.totalorder %s866_s4, %s651_s29  ;;  %s656_s8 = scalar_lea.hbm %s970_s1, 64 }
  0x30   : > { %p657_p12 = scmp.lt.u32.totalorder %s866_s4, %s970_s1  ;;  %p658_p0 = scmp.lt.u32.totalorder %s656_s8, %s651_s29 }
  0x31   : > { %p654_p11 = pnand %p652_p10, %p623_p13  ;;  %p660_p3 = scmp.lt.u32.totalorder %s651_s29, %s866_s4 }
  0x32   : > { %p659_p2 = por %p658_p0, %p657_p12 }
  0x33   : > { %p655_p8 = pneg %p654_p11 }
  0x34   : > { %p661_p4 = por %p660_p3, %p659_p2 }
  0x36   : > { %p662_p1 = pnand %p661_p4, %p655_p8 }
  0x38   : > { %665 = shalt.err (!%p662_p1)
}
  0x39   : > { %s666_s22 = scalar_lea.vmem %s166_s6, 32  ;;  %s738_s17 = smov [#allocation5]  }
  0x3a   : > { %p667_p5 = scmp.ne.s32.totalorder %s166_s6, %s666_s22  ;;  %s671_s18 = sshll.u32 %s738_s17, 4  ;;  %s672_s18 = int_to_ptr.vmem [resolvable:$false] %s671_s18 }
  0x3b   : > { %s673_s19 = scalar_lea.vmem %s672_s18, 64  ;;  %p674_p7 = scmp.lt.s32.totalorder %s166_s6, %s672_s18 }
  0x3c   : > { %p669_p10 = pnand %p667_p5, %p623_p13  ;;  %p675_p6 = scmp.lt.s32.totalorder %s673_s19, %s666_s22 }
  0x3e   : > { %p670_p11 = pneg %p669_p10  ;;  %p676_p0 = por %p675_p6, %p674_p7 }
  0x40   : > { %p677_p12 = pnand %p676_p0, %p670_p11 }
  0x42   : > { %680 = shalt.err (!%p677_p12)
}
  0x43   : > { %561 = dma.hbm_to_vmem [thread:$0]  (!%p819_p9), %s866_s4, 32, %s166_s6, %s152_s27  }
  0x44   : > { %p979_p8 = scmp.ne.s32.totalorder %s978_s23, 0 }
  0x45   : > { %s176_s24 = sand.u32 (!%p979_p8), 1, %s719_s10   ;;  %p980_p13 = scmp.ne.s32.totalorder (!%p979_p8), %s974_s20, 0 }
  0x46   : > { %174 = sbr.rel (%p979_p8) target bundleno = 310 (0x136), region = 28  ;;  %s542_s25 = sshll.u32 (!%p979_p8), %s176_s24, 3 }
  0x47   : > { %s177_s26 = scalar_lea.sflag (!%p979_p8), [#allocation4], %s176_s24  ;;  %s180_s28 = scalar_lea.vmem (!%p979_p8), [#allocation3], %s542_s25 }
  0x4d   : > { %706 = dma.done.wait (%p980_p13), %s177_s26, 128  }
  0x4e   : > { %708 = vsyncadd (%p980_p13), %s177_s26, 4294967168  ;;  %s543_s5 = sshll.u32 %s176_s24, 1  ;;  %s186_s29 = scalar_lea.sflag [#allocation6], %s176_s24 }
  0x4f   : > { %s189_s30 = scalar_lea.vmem [#allocation5], %s543_s5 }
  0x50   : > { %710 = dma.done.wait (%p980_p13), %s186_s29, 32  }
  0x51   : > { %712 = vsyncadd (%p980_p13), %s186_s29, 4294967264  ;;  %v739_v0 = vmov 0.0   ;;  %vm244_vm0 = vcmask 1043456   ;;  %v227_v1 = vlaneseq  ;;  %v899_v2 = vld [vmem:[%s180_s28] sm:$0xff]  ;;  %v226_v8 = vld [vmem:[%s189_s30] sm:$0x3] }
  0x52   : > { %224 = vst [vmem:[#allocation2] sm:$0xff] %v739_v0  ;;  %v240_v3 = vcombine.high %v899_v2, %v899_v2  ;;  %v259_v4 = vsel %vm244_vm0, %v899_v2, -inf  ;;  %v321_v12 = vcvt.s32.f32 %v226_v8  ;;  %v740_v16 = vmov 1966171168   ;;  %p216_p7 = scmp.lt.s32.totalorder %s727_s12, 1 }
  0x53   : > { %v260_v5 = vrot.slane %v259_v4, 4  ;;  %v228_v6 = vshrl.u32 %v227_v1, 7  ;;  %vm906_vm1 = vcmp.lt.s32.totalorder %v227_v1, 256  ;;  %v342_v17 = vunpack.c.l.s4 %v740_v16 }
  0x54   : > { %v266_v7 = vsel %vm244_vm0, %v240_v3, -inf  ;;  %s991_s12 = smov (!%p216_p7, %s727_s12), 1  ;;  %vm427_vm6 = vcmask 3072  }
  0x55   : > { %v261_v9 = vmax.f32 %v259_v4, %v260_v5  ;;  %v267_v10 = vrot.slane %v266_v7, 4  ;;  %v231_v19 = vsub.s32 0, %v228_v6  ;;  %v311_v22 = vsub.s32 4, %v228_v6  ;;  %s544_s20 = sshll.u32 %s991_s12, 2 }
  0x56   : > { %v343_v26 = vunpack.c.0.s8 %v342_v17  ;;  %v235_v27 = vsub.s32 1, %v228_v6  ;;  %s219_s6 = scalar_lea.vmem %s971_s2, %s544_s20 }
  0x57   : > { %v262_v13 = vrot.slane %v261_v9, 2  ;;  %v268_v14 = vmax.f32 %v266_v7, %v267_v10  ;;  %v308_v25 = vrot.slane %v899_v2, %v231_v19  ;;  %v312_v30 = vrot.slane %v899_v2, %v311_v22 }
  0x58   : > { %v326_v31 = vrot.slane %v321_v12, %v231_v19  ;;  %v330_v33 = vrot.slane %v321_v12, %v235_v27  ;;  %v922_v36 = vsub.s32 %v343_v26, %v228_v6  ;;  %v232_v49 = vrot.slane %v226_v8, %v231_v19 }
  0x59   : > { %v387_v11 = vld [vmem:[#allocation2 + $0x2] ss:$4 sm:$0x3]  ;;  %v263_v20 = vmax.f32 %v261_v9, %v262_v13  ;;  %v269_v21 = vrot.slane %v268_v14, 2  ;;  %v236_v52 = vrot.slane %v226_v8, %v235_v27 }
  0x5a   : > { %v389_v18 = vadd.f32 %v387_v11, %v321_v12  ;;  %v363_v45 = vld [vmem:[#allocation2 + $0x1] ss:$4 sm:$0x3]  ;;  %v392_v48 = vld [vmem:[#allocation2 + $0x3] ss:$4 sm:$0x3]  ;;  %vm237_vm4 = vcmp.eq.s32.totalorder %v228_v6, %v232_v49 }
  0x5b   : > { %v264_v23 = vrot.slane %v263_v20, 1  ;;  %v270_v24 = vmax.f32 %v268_v14, %v269_v21  ;;  %vm238_vm5 = vcmp.eq.s32.totalorder %v228_v6, %v236_v52  ;;  %v242_v54 = vsel %vm237_vm4, %v899_v2, 0.0 }
  0x5c   : > { %390 = vst.msk [vmem:[#allocation2 + $0x2] ss:$4 sm:$0x3] %vm906_vm1, %v389_v18  ;;  %v243_v56 = vsel %vm238_vm5, %v240_v3, 0.0  ;;  %v245_v59 = vsel %vm244_vm0, %v242_v54, 0.0 }
  0x5d   : > { %v913_v28 = vmax.f32 %v263_v20, %v264_v23  ;;  %v271_v29 = vrot.slane %v270_v24, 1  ;;  %v252_v62 = vsel %vm244_vm0, %v243_v56, 0.0  ;;  %v246_v1 = vrot.slane %v245_v59, 4 }
  0x5e   : > { %v253_v6 = vrot.slane %v252_v62, 4 }
  0x5f   : > { %v916_v32 = vmax.f32 %v270_v24, %v271_v29  ;;  %vm315_vm2 = vcmp.gt.f32.partialorder %v913_v28, %v308_v25  ;;  %v247_v8 = vadd.f32 %v246_v1, %v245_v59 }
  0x60   : > { %v545_v34 = vsel %vm315_vm2, 1.0, %v739_v0  ;;  %v254_v10 = vadd.f32 %v253_v6, %v252_v62 }
  0x61   : > { %v275_v35 = vcombine.low %v913_v28, %v916_v32  ;;  %vm316_vm3 = vcmp.gt.f32.partialorder %v916_v32, %v312_v30  ;;  %v333_v38 = vmul.f32 %v545_v34, %v326_v31  ;;  %v248_v13 = vrot.slane %v247_v8, 2 }
  0x62   : > { %v546_v37 = vsel %vm316_vm3, 1.0, %v739_v0  ;;  %v255_v16 = vrot.slane %v254_v10, 2 }
  0x63   : > { %v277_v39 = vsub.f32 %v899_v2, %v275_v35  ;;  %v334_v40 = vmul.f32 %v546_v37, %v330_v33  ;;  %v368_v41 = vcombine.low %v545_v34, %v546_v37  ;;  %v249_v17 = vadd.f32 %v248_v13, %v247_v8  ;;  %v335_v35 = vld [vmem:[#allocation2] ss:$4 sm:$0x3] }
  0x64   : > { %v256_v18 = vadd.f32 %v255_v16, %v254_v10 }
  0x65   : > { %v278_v42 = vmul.f32 1.442695, %v277_v39  ;;  %v375_v43 = vrot.slane %v368_v41, %v922_v36  ;;  %v397_v44 = vcombine.low %v333_v38, %v334_v40  ;;  %v250_v19 = vrot.slane %v249_v17, 1 }
  0x66   : > { %v257_v20 = vrot.slane %v256_v18, 1 }
  0x67   : > { %615 = vpow2.f32 %v278_v42  ;;  %v382_v46 = vrot.slane %v375_v43, %v922_v36  ;;  %v404_v47 = vrot.slane %v397_v44, %v922_v36  ;;  %v251_v22 = vadd.f32 %v250_v19, %v249_v17 }
  0x68   : > { %v258_v25 = vadd.f32 %v257_v20, %v256_v18 }
  0x69   : > { %v384_v50 = vadd.f32 %v382_v46, %v363_v45  ;;  %v411_v51 = vrot.slane %v404_v47, %v922_v36 }
  0x6b   : > { %385 = vst.msk [vmem:[#allocation2 + $0x1] ss:$4 sm:$0x3] %vm906_vm1, %v384_v50  ;;  %v413_v53 = vadd.f32 %v411_v51, %v392_v48 }
  0x6d   : > { %414 = vst.msk [vmem:[#allocation2 + $0x3] ss:$4 sm:$0x3] %vm906_vm1, %v413_v53 }
  0x71   : > { %v616_v55 = vpop.eup %615 }
  0x72   : > { %v281_v57 = vcombine.high %v616_v55, %v616_v55  ;;  %v283_v58 = vsel %vm244_vm0, %v616_v55, 0.0 }
  0x73   : > { %v284_v60 = vrot.slane %v283_v58, 4 }
  0x74   : > { %v290_v61 = vsel %vm244_vm0, %v281_v57, 0.0 }
  0x75   : > { %v285_v63 = vadd.f32 %v284_v60, %v283_v58  ;;  %v291_v0 = vrot.slane %v290_v61, 4 }
  0x77   : > { %v286_v4 = vrot.slane %v285_v63, 2  ;;  %v292_v5 = vadd.f32 %v291_v0, %v290_v61 }
  0x79   : > { %v287_v7 = vadd.f32 %v286_v4, %v285_v63  ;;  %v293_v2 = vrot.slane %v292_v5, 2 }
  0x7b   : > { %v288_v3 = vrot.slane %v287_v7, 1  ;;  %v294_v9 = vadd.f32 %v293_v2, %v292_v5 }
  0x7d   : > { %v289_v11 = vadd.f32 %v288_v3, %v287_v7  ;;  %v295_v12 = vrot.slane %v294_v9, 1 }
  0x7f   : > { %v296_v14 = vadd.f32 %v295_v12, %v294_v9  ;;  %617 = vlog2.f32 %v289_v11 }
  0x81   : > { %619 = vlog2.f32 %v296_v14 }
  0x89   : > { %v618_v21 = vpop.eup %617 }
  0x8a   : > { %v298_v23 = vmul.f32 0.6931472, %v618_v21 }
  0x8b   : > { %v620_v24 = vpop.eup %619 }
  0x8c   : > { %v300_v26 = vmul.f32 0.6931472, %v620_v24  ;;  %v301_v27 = vadd.f32 %v298_v23, %v913_v28 }
  0x8e   : > { %v302_v29 = vadd.f32 %v300_v26, %v916_v32  ;;  %v303_v30 = vsub.f32 %v301_v27, %v251_v22 }
  0x90   : > { %v304_v31 = vsub.f32 %v302_v29, %v258_v25 }
  0x92   : > { %v340_v33 = vcombine.low %v303_v30, %v304_v31 }
  0x94   : > { %v347_v34 = vrot.slane %v340_v33, %v922_v36 }
  0x96   : > { %v354_v37 = vrot.slane %v347_v34, %v922_v36 }
  0x98   : > { %v356_v38 = vadd.f32 %v354_v37, %v335_v35 }
  0x9a   : > { %361 = vst.msk [vmem:[#allocation2] ss:$4 sm:$0x3] %vm906_vm1, %v356_v38 }
  0xa1   : > { %v418_v39 = vld [vmem:[#allocation2] sm:$0xff] }
  0xa2   : > { %v420_v40 = vcombine.high %v418_v39, %v418_v39  ;;  %v422_v28 = vsel %vm244_vm0, %v418_v39, 0.0 }
  0xa4   : > { %v423_v41 = vsel %vm244_vm0, %v420_v40, 0.0 }
  0xa5   : > { %v424_v32 = vadd.f32 %v423_v41, %v422_v28 }
  0xa7   : > { %425 = vadd.xlane.f32.xlu0 %v424_v32 }
 0x134   : > { %v426_v36 = vpop.xlane.xlu0 %425 }
 0x135   : > { %428 = vst.msk [vmem:[%s219_s6] sm:$0xf] %vm427_vm6, %v426_v36 }
 0x136 PF: > { %s18_s14 = sadd.s32 1, %s735_s14   ;;  %s983_s9 = smov %s719_s10 }
 0x137   : > { %p15_p9 = scmp.ge.s32.totalorder %s18_s14, 4   ;;  %s984_s10 = smov %s723_s11 }
 0x138   : > { %s985_s11 = smov %s805_s21  ;;  %s986_s12 = smov %s731_s13 }
 0x139   : > { %s987_s13 = smov %s989_s16  ;;  %17 = sbr.rel (!%p15_p9) target bundleno = 6 (0x6), region = 92 }
 0x140   :  { %448 = vsyncpa [#allocation4], 1 }
 0x141   :  { %450 = vsyncpa [#allocation4 + $0x1], 1 }
 0x142   :  { %451 = vsyncpa [#allocation6], 1 }
 0x143   :  { %453 = vsyncpa [#allocation6 + $0x1], 1 }

</bundles_post_ra>
